<compile_context>
chip_gen: v5e
topology: v5e:2x2
jax: 0.10.0
libtpu: 0.0.40
codegen_flags: <defaults>
</compile_context>

<pallas_src>
import jax
import jax.numpy as jnp
from jax.experimental import pallas as pl
from jax.experimental.pallas import tpu as pltpu

CONV_OUT = 5        # conv_output_channel in the PyTorch module
KERNEL = 17         # Conv1d kernel size
NUM_CLASSES = 2


def model_kernel(slab_ref, cw_ref, fc_ref, out_ref):
    """Fused Conv1d(+ReLU) + global-avg-pool + MLP head, all resident in VMEM.

    slab_ref : (B*Lout, K*Cin) host-built im2col slab (lane-dense)
    cw_ref   : (K*Cin, Cout)   conv weight, k-major / ci-minor rows
    fc_ref   : (40, Cout)      small param slab, 8-row aligned sections:
                 row  0       conv bias
                 rows 8..12   fc1 weight (in, out), 1/Lout pooling scale folded in
                 row  16      fc1 bias
                 rows 24..28  fc2 weight (in, out), zero-padded cols
                 row  32      fc2 bias, zero-padded cols
    out_ref  : (B, NUM_CLASSES)
    """
    b, n_cls = out_ref.shape
    c_out = cw_ref.shape[1]
    l_out = slab_ref.shape[0] // b

    # --- Conv1d as ONE 2-D im2col matmul (single clean MXU push sequence) ---
    conv = jnp.dot(slab_ref[...], cw_ref[...],
                   preferred_element_type=jnp.float32)              # (B*Lout, Cout)
    conv = jnp.maximum(conv + fc_ref[0:1, :], 0.0)                  # bias + ReLU

    # --- AdaptiveAvgPool1d(1): sum per 16-row group (1/Lout folded in fc1_w) -
    pooled = jnp.sum(conv.reshape(b, l_out, c_out), axis=1)         # (B, Cout)

    # --- output_fc: Linear(5,5) + ReLU + Linear(5,2) + Sigmoid ---------------
    w1 = fc_ref[8:8 + c_out, :]                                     # (Cout, Cout)
    b1 = fc_ref[16:17, :]                                           # (1, Cout)
    h = jnp.maximum(
        jnp.dot(pooled, w1, preferred_element_type=jnp.float32) + b1, 0.0)

    w2 = fc_ref[24:24 + c_out, :]                                   # zero-padded cols
    b2 = fc_ref[32:33, :]                                           # zero-padded cols
    logits = jnp.dot(h, w2, preferred_element_type=jnp.float32) + b2
    out_ref[...] = jax.nn.sigmoid(logits[:, 0:n_cls])


def _pad_rows_to_8(x):
    r = x.shape[0]
    pad = (-r) % 8
    return jnp.pad(x, ((0, pad), (0, 0)))


def _pack_fc_params(params, l_out):
    """Pack bias/FC params into a (40, Cout) slab with 8-row aligned sections."""
    c_out = CONV_OUT
    conv_b = params["conv_b"].reshape(1, c_out)
    fc1_w = params["fc1_w"].T / float(l_out)        # fold avg-pool scale here
    fc1_b = params["fc1_b"].reshape(1, c_out)
    fc2_w = jnp.pad(params["fc2_w"].T, ((0, 0), (0, c_out - NUM_CLASSES)))
    fc2_b = jnp.pad(params["fc2_b"].reshape(1, NUM_CLASSES),
                    ((0, 0), (0, c_out - NUM_CLASSES)))
    return jnp.concatenate(
        [_pad_rows_to_8(conv_b), _pad_rows_to_8(fc1_w), _pad_rows_to_8(fc1_b),
         _pad_rows_to_8(fc2_w), _pad_rows_to_8(fc2_b)],
        axis=0).astype(jnp.float32)                                 # (40, Cout)


@jax.jit
def model_forward(bs1, bs2, beeg, targets, params):
    """Wrapper matching Model.forward(bs1, bs2, beeg, targets)."""
    visualization_weights = []
    # torch concat([bs1, beeg, bs2], dim=1); the original .squeeze() is a no-op
    # for B > 1 and unsafe for B == 1, so it is intentionally omitted.
    data = jnp.concatenate([bs1, beeg, bs2], axis=1)                # (B, C, L)
    x = jnp.transpose(data, (0, 2, 1)).astype(jnp.float32)          # (B, L, Cin) NLC
    B, L, c_in = x.shape
    l_out = L - KERNEL + 1
    kc = KERNEL * c_in

    # Host-side im2col (XLA-fused with the dispatch): lane-dense (B*Lout, kc).
    # slab[b*Lout + t, k*Cin + ci] = x[b, t + k, ci]
    slab = jnp.concatenate([x[:, k:k + l_out, :] for k in range(KERNEL)],
                           axis=-1).reshape(B * l_out, kc)

    # Conv weight rows match the slab layout: row k*Cin+ci, col co.
    conv_w = jnp.transpose(params["conv_w"], (2, 1, 0)).reshape(kc, CONV_OUT)
    conv_w = conv_w.astype(jnp.float32)
    fc_pack = _pack_fc_params(params, l_out)                        # (40, Cout)

    flops = (2 * B * l_out * kc * CONV_OUT
             + 2 * B * CONV_OUT * CONV_OUT       # fc1
             + 2 * B * CONV_OUT * CONV_OUT)      # fc2 (padded cols)
    bytes_accessed = 4 * (slab.size + conv_w.size + fc_pack.size
                          + B * NUM_CLASSES)

    vmem = pl.BlockSpec(memory_space=pltpu.MemorySpace.VMEM)
    out = pl.pallas_call(
        model_kernel,
        out_shape=jax.ShapeDtypeStruct((B, NUM_CLASSES), jnp.float32),
        in_specs=[vmem, vmem, vmem],
        out_specs=vmem,
        cost_estimate=pl.CostEstimate(
            flops=flops,
            transcendentals=2 * B * NUM_CLASSES,   # exp + recip per sigmoid elem
            bytes_accessed=bytes_accessed),
    )(slab, conv_w, fc_pack)
    return out, targets, visualization_weights


if __name__ == "__main__":
    key = jax.random.PRNGKey(0)
    keys = jax.random.split(key, 10)

    # Small shapes consistent with the module: concat along the channel dim
    # gives args.channel_number = 2 + 4 + 2 = 8 channels, sequence length 32.
    B, L = 4, 32
    bs1 = jax.random.normal(keys[0], (B, 2, L), jnp.float32)
    bs2 = jax.random.normal(keys[1], (B, 2, L), jnp.float32)
    beeg = jax.random.normal(keys[2], (B, 4, L), jnp.float32)
    targets = jax.random.randint(keys[3], (B,), 0, 2)

    C_in = 2 + 4 + 2
    conv_bound = 1.0 / (C_in * KERNEL) ** 0.5
    fc_bound = 1.0 / CONV_OUT ** 0.5
    params = {
        "conv_w": jax.random.uniform(keys[4], (CONV_OUT, C_in, KERNEL),
                                     jnp.float32, -conv_bound, conv_bound),
        "conv_b": jax.random.uniform(keys[5], (CONV_OUT,), jnp.float32,
                                     -conv_bound, conv_bound),
        "fc1_w": jax.random.uniform(keys[6], (CONV_OUT, CONV_OUT), jnp.float32,
                                    -fc_bound, fc_bound),
        "fc1_b": jax.random.uniform(keys[7], (CONV_OUT,), jnp.float32,
                                    -fc_bound, fc_bound),
        "fc2_w": jax.random.uniform(keys[8], (NUM_CLASSES, CONV_OUT), jnp.float32,
                                    -fc_bound, fc_bound),
        "fc2_b": jax.random.uniform(keys[9], (NUM_CLASSES,), jnp.float32,
                                    -fc_bound, fc_bound),
    }

    out, tgt, vw = model_forward(bs1, bs2, beeg, targets, params)
    jax.block_until_ready(out)
    assert out.shape == (B, NUM_CLASSES) and out.dtype == jnp.float32

    # Pure-JAX reference (mirrors the PyTorch forward) for a correctness check.
    data = jnp.concatenate([bs1, beeg, bs2], axis=1)
    conv = jax.lax.conv_general_dilated(
        data, params["conv_w"], window_strides=(1,), padding="VALID",
        dimension_numbers=("NCH", "OIH", "NCH"))
    conv = jax.nn.relu(conv + params["conv_b"][None, :, None])
    pooled = jnp.mean(conv, axis=-1)
    h = jax.nn.relu(pooled @ params["fc1_w"].T + params["fc1_b"])
    ref = jax.nn.sigmoid(h @ params["fc2_w"].T + params["fc2_b"])
    assert jnp.allclose(out, ref, atol=1e-5, rtol=1e-5), "mismatch vs reference"

    print("KERNEL_OK")
</pallas_src>

<mosaic_0001>
module attributes {stable_mosaic.version = 11 : i64} {
  func.func @model_kernel(%arg0: memref<64x136xf32, #tpu.memory_space<vmem>>, %arg1: memref<136x5xf32, #tpu.memory_space<vmem>>, %arg2: memref<40x5xf32, #tpu.memory_space<vmem>>, %arg3: memref<4x2xf32, #tpu.memory_space<vmem>>) attributes {dimension_semantics = [], scalar_prefetch = 0 : i64, scratch_operands = 0 : i64, tpu.core_type = #tpu.core_type<tc>} {
    %c0 = arith.constant 0 : index
    %c0_0 = arith.constant 0 : index
    %0 = vector.load %arg0[%c0, %c0_0] : memref<64x136xf32, #tpu.memory_space<vmem>>, vector<64x136xf32>
    %c0_1 = arith.constant 0 : index
    %c0_2 = arith.constant 0 : index
    %1 = vector.load %arg1[%c0_1, %c0_2] : memref<136x5xf32, #tpu.memory_space<vmem>>, vector<136x5xf32>
    %cst = arith.constant dense<0.000000e+00> : vector<64x5xf32>
    %2 = tpu.matmul %0, %1, %cst {dimension_numbers = #tpu.dot_dimension_numbers<[1], [0], [0], [1], [0, 0, 1, 1], [], []>} : vector<64x136xf32>, vector<136x5xf32>, vector<64x5xf32> -> vector<64x5xf32>
    %c0_3 = arith.constant 0 : index
    %c0_4 = arith.constant 0 : index
    %3 = vector.load %arg2[%c0_3, %c0_4] : memref<40x5xf32, #tpu.memory_space<vmem>>, vector<1x5xf32>
    %4 = vector.broadcast %3 : vector<1x5xf32> to vector<64x5xf32>
    %5 = arith.addf %2, %4 : vector<64x5xf32>
    %cst_5 = arith.constant 0.000000e+00 : f32
    %6 = vector.broadcast %cst_5 : f32 to vector<64x5xf32>
    %7 = arith.maximumf %5, %6 : vector<64x5xf32>
    %8 = vector.shape_cast %7 : vector<64x5xf32> to vector<4x16x5xf32>
    %cst_6 = arith.constant dense<0.000000e+00> : vector<4x5xf32>
    %9 = vector.multi_reduction <add>, %8, %cst_6 [1] : vector<4x16x5xf32> to vector<4x5xf32>
    %c8 = arith.constant 8 : index
    %c0_7 = arith.constant 0 : index
    %10 = vector.load %arg2[%c8, %c0_7] : memref<40x5xf32, #tpu.memory_space<vmem>>, vector<5x5xf32>
    %c16 = arith.constant 16 : index
    %c0_8 = arith.constant 0 : index
    %11 = vector.load %arg2[%c16, %c0_8] : memref<40x5xf32, #tpu.memory_space<vmem>>, vector<1x5xf32>
    %cst_9 = arith.constant dense<0.000000e+00> : vector<4x5xf32>
    %12 = tpu.matmul %9, %10, %cst_9 {dimension_numbers = #tpu.dot_dimension_numbers<[1], [0], [0], [1], [0, 0, 1, 1], [], []>} : vector<4x5xf32>, vector<5x5xf32>, vector<4x5xf32> -> vector<4x5xf32>
    %13 = vector.broadcast %11 : vector<1x5xf32> to vector<4x5xf32>
    %14 = arith.addf %12, %13 : vector<4x5xf32>
    %cst_10 = arith.constant 0.000000e+00 : f32
    %15 = vector.broadcast %cst_10 : f32 to vector<4x5xf32>
    %16 = arith.maximumf %14, %15 : vector<4x5xf32>
    %c24 = arith.constant 24 : index
    %c0_11 = arith.constant 0 : index
    %17 = vector.load %arg2[%c24, %c0_11] : memref<40x5xf32, #tpu.memory_space<vmem>>, vector<5x5xf32>
    %c32 = arith.constant 32 : index
    %c0_12 = arith.constant 0 : index
    %18 = vector.load %arg2[%c32, %c0_12] : memref<40x5xf32, #tpu.memory_space<vmem>>, vector<1x5xf32>
    %cst_13 = arith.constant dense<0.000000e+00> : vector<4x5xf32>
    %19 = tpu.matmul %16, %17, %cst_13 {dimension_numbers = #tpu.dot_dimension_numbers<[1], [0], [0], [1], [0, 0, 1, 1], [], []>} : vector<4x5xf32>, vector<5x5xf32>, vector<4x5xf32> -> vector<4x5xf32>
    %20 = vector.broadcast %18 : vector<1x5xf32> to vector<4x5xf32>
    %21 = arith.addf %19, %20 : vector<4x5xf32>
    %22 = vector.extract_strided_slice %21 {offsets = [0, 0], sizes = [4, 2], strides = [1, 1]} : vector<4x5xf32> to vector<4x2xf32>
    %23 = arith.negf %22 : vector<4x2xf32>
    %24 = math.exp %23 : vector<4x2xf32>
    %cst_14 = arith.constant 1.000000e+00 : f32
    %25 = vector.broadcast %cst_14 : f32 to vector<4x2xf32>
    %26 = arith.addf %25, %24 : vector<4x2xf32>
    %27 = arith.divf %25, %26 : vector<4x2xf32>
    %c0_15 = arith.constant 0 : index
    %c0_16 = arith.constant 0 : index
    %28 = vector.load %arg3[%c0_15, %c0_16] : memref<4x2xf32, #tpu.memory_space<vmem>>, vector<4x2xf32>
    tpu.vector_store %arg3[%c0_15, %c0_16], %27 {strides = array<i32>} : memref<4x2xf32, #tpu.memory_space<vmem>>, vector<4x2xf32>,
    return
  }
}

</mosaic_0001>

<bundles_post_ra>
// kernel: model_forward.1
= control target key start
LH: loop header
LB: loop body
LE: loop exit
PB: predicated region body
PF: predicated region fallthrough
CT: control target
= control target key end

     0   :  { %vm49_vm0 = vcmask 64512   ;;  %vm216_vm1 = vcmask 1044480   ;;  %vm164_vm2 = vcmask 39936   ;;  %vm208_vm3 = vcmask 1041409   ;;  %s504_s1 = inlined_call_operand.vmem [shape: f32[136,5], index: 1, kind: input, shape index: {}]   ;;  %s505_s0 = inlined_call_operand.vmem [shape: f32[64,136], index: 0, kind: input, shape index: {}]   ;;  %s506_s2 = inlined_call_operand.vmem [shape: f32[40,5], index: 2, kind: input, shape index: {}]   ;;  %s507_s3 = inlined_call_operand.vmem [shape: f32[4,2], index: 3, kind: output, shape index: {}]  }
   0x1   :  { %v45_v0 = vld [vmem:[%s504_s1 + $0x78] sm:$0xff]  ;;  %v46_v1 = vld [vmem:[%s504_s1 + $0x80] sm:$0xff]  ;;  %v15_v2 = vld [vmem:[%s505_s0 + $0x8] sm:$0xff]  ;;  %vm210_vm4 = vcmask 1042434   ;;  %vm212_vm5 = vcmask 1043459   ;;  %vm289_vm9 = vcmask 11264  }
   0x2   :  { %74 = vmatpush.msra.mxu0 %v45_v0  ;;  %308 = vmatpush.msra.mxu2 %v45_v0  ;;  %v44_v3 = vld [vmem:[%s504_s1 + $0x70] sm:$0xff]  ;;  %v43_v4 = vld [vmem:[%s504_s1 + $0x68] sm:$0xff]  ;;  %v42_v5 = vld [vmem:[%s504_s1 + $0x60] sm:$0xff] }
   0x3   :  { %130 = vmatpush.msra.mxu1 %v46_v1  ;;  %309 = vmatpush.msra.mxu3 %v45_v0  ;;  %v41_v6 = vld [vmem:[%s504_s1 + $0x58] sm:$0xff]  ;;  %v40_v8 = vld [vmem:[%s504_s1 + $0x50] sm:$0xff]  ;;  %v39_v9 = vld [vmem:[%s504_s1 + $0x48] sm:$0xff] }
   0x4   :  { %295 = vmatmul.msk.f32.vlgmr.msra.gmra.mxu1 %vm49_vm0, %v15_v2  ;;  %75 = vmatpush.msra.mxu0 %v44_v3  ;;  %v17_v7 = vld [vmem:[%s505_s0 + $0x18] sm:$0xff]  ;;  %v38_v10 = vld [vmem:[%s504_s1 + $0x40] sm:$0xff]  ;;  %v19_v12 = vld [vmem:[%s505_s0 + $0x28] sm:$0xff] }
   0x5   :  { %310 = vmatpush.msra.mxu2 %v44_v3  ;;  %311 = vmatpush.msra.mxu3 %v44_v3  ;;  %v37_v11 = vld [vmem:[%s504_s1 + $0x38] sm:$0xff]  ;;  %v36_v13 = vld [vmem:[%s504_s1 + $0x30] sm:$0xff]  ;;  %v35_v14 = vld [vmem:[%s504_s1 + $0x28] sm:$0xff] }
   0x6   :  { %76 = vmatpush.msra.mxu0 %v43_v4  ;;  %v34_v15 = vld [vmem:[%s504_s1 + $0x20] sm:$0xff]  ;;  %v33_v16 = vld [vmem:[%s504_s1 + $0x18] sm:$0xff]  ;;  %v32_v18 = vld [vmem:[%s504_s1 + $0x10] sm:$0xff] }
   0x7   :  { %312 = vmatpush.msra.mxu2 %v43_v4  ;;  %313 = vmatpush.msra.mxu3 %v43_v4  ;;  %v21_v17 = vld [vmem:[%s505_s0 + $0x38] sm:$0xff]  ;;  %v31_v19 = vld [vmem:[%s504_s1 + $0x8] sm:$0xff]  ;;  %v30_v20 = vld [vmem:[%s504_s1] sm:$0xff] }
   0x8   :  { %77 = vmatpush.msra.mxu0 %v42_v5  ;;  %v14_v21 = vld [vmem:[%s505_s0] sm:$0xff]  ;;  %v20_v22 = vld [vmem:[%s505_s0 + $0x30] sm:$0xff]  ;;  %v23_v24 = vld [vmem:[%s505_s0 + $0x48] sm:$0xff] }
   0x9   :  { %314 = vmatpush.msra.mxu2 %v42_v5  ;;  %315 = vmatpush.msra.mxu3 %v42_v5  ;;  %v26_v23 = vld [vmem:[%s505_s0 + $0x60] sm:$0xff]  ;;  %v16_v25 = vld [vmem:[%s505_s0 + $0x10] sm:$0xff]  ;;  %v25_v28 = vld [vmem:[%s505_s0 + $0x58] sm:$0xff] }
   0xa   :  { %78 = vmatpush.msra.mxu0 %v41_v6  ;;  %v22_v26 = vld [vmem:[%s505_s0 + $0x40] sm:$0xff]  ;;  %v28_v27 = vld [vmem:[%s505_s0 + $0x70] sm:$0xff]  ;;  %v27_v31 = vld [vmem:[%s505_s0 + $0x68] sm:$0xff] }
   0xb   :  { %316 = vmatpush.msra.mxu2 %v41_v6  ;;  %317 = vmatpush.msra.mxu3 %v41_v6  ;;  %v18_v29 = vld [vmem:[%s505_s0 + $0x20] sm:$0xff]  ;;  %v24_v30 = vld [vmem:[%s505_s0 + $0x50] sm:$0xff]  ;;  %v29_v32 = vld [vmem:[%s505_s0 + $0x78] sm:$0xff] }
   0xc   :  { %296 = vmatmul.msk.f32.gmra.mxu1 %vm49_vm0, %v17_v7  ;;  %79 = vmatpush.msra.mxu0 %v40_v8  ;;  %v340_v37 = vld [vmem:[%s506_s2] ss:$0 sm:$0xff]  ;;  %v201_v45 = vld [vmem:[%s506_s2 + $0x8] sm:$0x1f]  ;;  %v241_v57 = vld [vmem:[%s506_s2 + $0x18] sm:$0x1f] }
   0xd   :  { %318 = vmatpush.msra.mxu2 %v40_v8  ;;  %319 = vmatpush.msra.mxu3 %v40_v8 }
   0xe   :  { %80 = vmatpush.msra.mxu0 %v39_v9 }
   0xf   :  { %320 = vmatpush.msra.mxu2 %v39_v9  ;;  %321 = vmatpush.msra.mxu3 %v39_v9 }
  0x10   :  { %81 = vmatpush.msra.mxu0 %v38_v10 }
  0x11   :  { %322 = vmatpush.msra.mxu2 %v38_v10  ;;  %323 = vmatpush.msra.mxu3 %v38_v10 }
  0x12   :  { %82 = vmatpush.msra.mxu0 %v37_v11 }
  0x13   :  { %324 = vmatpush.msra.mxu2 %v37_v11  ;;  %325 = vmatpush.msra.mxu3 %v37_v11 }
  0x14   :  { %297 = vmatmul.msk.f32.gmra.mxu1 %vm49_vm0, %v19_v12  ;;  %83 = vmatpush.msra.mxu0 %v36_v13 }
  0x15   :  { %326 = vmatpush.msra.mxu2 %v36_v13  ;;  %327 = vmatpush.msra.mxu3 %v36_v13 }
  0x16   :  { %84 = vmatpush.msra.mxu0 %v35_v14 }
  0x17   :  { %328 = vmatpush.msra.mxu2 %v35_v14  ;;  %329 = vmatpush.msra.mxu3 %v35_v14 }
  0x18   :  { %85 = vmatpush.msra.mxu0 %v34_v15 }
  0x19   :  { %330 = vmatpush.msra.mxu2 %v34_v15  ;;  %331 = vmatpush.msra.mxu3 %v34_v15 }
  0x1a   :  { %86 = vmatpush.msra.mxu0 %v33_v16 }
  0x1b   :  { %332 = vmatpush.msra.mxu2 %v33_v16  ;;  %333 = vmatpush.msra.mxu3 %v33_v16 }
  0x1c   :  { %298 = vmatmul.msk.f32.gmra.mxu1 %vm49_vm0, %v21_v17  ;;  %87 = vmatpush.msra.mxu0 %v32_v18 }
  0x1d   :  { %334 = vmatpush.msra.mxu2 %v32_v18  ;;  %335 = vmatpush.msra.mxu3 %v32_v18 }
  0x1e   :  { %88 = vmatpush.msra.mxu0 %v31_v19 }
  0x1f   :  { %336 = vmatpush.msra.mxu2 %v31_v19  ;;  %337 = vmatpush.msra.mxu3 %v31_v19 }
  0x20   :  { %89 = vmatpush.msra.mxu0 %v30_v20 }
  0x21   :  { %338 = vmatpush.msra.mxu2 %v30_v20  ;;  %90 = vmatmul.f32.vlgmr.msra.gmra.mxu0 %v14_v21 }
  0x22   :  { %99 = vmatmul.f32.vlgmr.msra.gmra.mxu2 %v20_v22  ;;  %339 = vmatpush.msra.mxu3 %v30_v20 }
  0x23   :  { %108 = vmatmul.f32.vlgmr.msra.gmra.mxu3 %v26_v23  ;;  %303 = vmatpush.msk.msrb.mxu2 %vm216_vm1, %v201_v45 }
  0x24   :  { %299 = vmatmul.msk.f32.gmra.mxu1 %vm49_vm0, %v23_v24  ;;  %305 = vmatpush.msk.msrb.mxu3 %vm216_vm1, %v241_v57 }
  0x29   :  { %93 = vmatmul.f32.gmra.mxu0 %v16_v25 }
  0x2a   :  { %102 = vmatmul.f32.gmra.mxu2 %v22_v26 }
  0x2b   :  { %111 = vmatmul.f32.gmra.mxu3 %v28_v27 }
  0x2c   :  { %300 = vmatmul.msk.f32.gmra.mxu1 %vm49_vm0, %v25_v28 }
  0x31   :  { %96 = vmatmul.f32.gmra.mxu0 %v18_v29 }
  0x32   :  { %105 = vmatmul.f32.gmra.mxu2 %v24_v30 }
  0x34   :  { %301 = vmatmul.msk.f32.gmra.mxu1 %vm49_vm0, %v27_v31 }
  0x3c   :  { %302 = vmatmul.msk.f32.gmra.mxu1 %vm49_vm0, %v29_v32 }
  0x81   :  { %v132_v33 = vpop.f32.mrf.mxu1 }
  0x89   :  { %v135_v34 = vpop.f32.mrf.mxu1 }
  0x91   :  { %v138_v35 = vpop.f32.mrf.mxu1 }
  0x99   :  { %v141_v36 = vpop.f32.mrf.mxu1 }
  0x9e   :  { %v91_v38 = vpop.f32.mrf.mxu0 }
  0x9f   :  { %v92_v40 = vadd.f32 %v340_v37, %v91_v38 }
  0xa1   :  { %v144_v39 = vpop.f32.mrf.mxu1  ;;  %v133_v42 = vadd.f32 %v132_v33, %v92_v40 }
  0xa3   :  { %v156_v50 = vmax.f32 %v133_v42, 0.0 }
  0xa5   :  { %v100_v41 = vpop.f32.mrf.mxu2  ;;  %v165_v55 = vsel %vm164_vm2, %v156_v50, 0.0 }
  0xa6   :  { %v94_v43 = vpop.f32.mrf.mxu0  ;;  %v101_v46 = vadd.f32 %v340_v37, %v100_v41  ;;  %v109_v49 = vpop.f32.mrf.mxu3 }
  0xa7   :  { %v95_v44 = vadd.f32 %v340_v37, %v94_v43  ;;  %v110_v0 = vadd.f32 %v340_v37, %v109_v49 }
  0xa8   :  { %v142_v52 = vadd.f32 %v141_v36, %v101_v46 }
  0xa9   :  { %v136_v47 = vadd.f32 %v135_v34, %v95_v44  ;;  %v147_v48 = vpop.f32.mrf.mxu1 }
  0xaa   :  { %v159_v61 = vmax.f32 %v142_v52, 0.0 }
  0xab   :  { %v157_v51 = vmax.f32 %v136_v47, 0.0 }
  0xac   :  { %v175_v5 = vsel %vm164_vm2, %v159_v61, 0.0 }
  0xad   :  { %v166_v53 = vsel %vm164_vm2, %v157_v51, 0.0  ;;  %v103_v54 = vpop.f32.mrf.mxu2  ;;  %v341_v51 = vld [vmem:[%s506_s2 + $0x10] ss:$0 sm:$0xff] }
  0xae   :  { %v97_v56 = vpop.f32.mrf.mxu0  ;;  %v167_v58 = vadd.f32 %v166_v53, %v165_v55  ;;  %v104_v60 = vadd.f32 %v340_v37, %v103_v54  ;;  %v112_v3 = vpop.f32.mrf.mxu3  ;;  %v342_v55 = vld [vmem:[%s506_s2 + $0x20] ss:$0 sm:$0xff] }
  0xaf   :  { %v98_v59 = vadd.f32 %v340_v37, %v97_v56  ;;  %v113_v11 = vadd.f32 %v340_v37, %v112_v3 }
  0xb0   :  { %v168_v1 = vrot.slane %v167_v58, 4  ;;  %v145_v4 = vadd.f32 %v144_v39, %v104_v60 }
  0xb1   :  { %v139_v62 = vadd.f32 %v138_v35, %v98_v59  ;;  %v150_v63 = vpop.f32.mrf.mxu1 }
  0xb2   :  { %v151_v9 = vadd.f32 %v150_v63, %v110_v0  ;;  %v169_v12 = vadd.f32 %v168_v1, %v167_v58  ;;  %v160_v13 = vmax.f32 %v145_v4, 0.0 }
  0xb3   :  { %v158_v2 = vmax.f32 %v139_v62, 0.0 }
  0xb4   :  { %v162_v18 = vmax.f32 %v151_v9, 0.0  ;;  %v170_v21 = vrot.slane %v169_v12, 2  ;;  %v183_v22 = vsel %vm164_vm2, %v160_v13, 0.0 }
  0xb5   :  { %v174_v6 = vsel %vm164_vm2, %v158_v2, 0.0  ;;  %v106_v7 = vpop.f32.mrf.mxu2 }
  0xb6   :  { %v176_v8 = vadd.f32 %v175_v5, %v174_v6  ;;  %v107_v10 = vadd.f32 %v340_v37, %v106_v7  ;;  %v192_v28 = vsel %vm164_vm2, %v162_v18, 0.0  ;;  %v171_v32 = vadd.f32 %v170_v21, %v169_v12 }
  0xb8   :  { %v177_v14 = vrot.slane %v176_v8, 4  ;;  %v148_v15 = vadd.f32 %v147_v48, %v107_v10  ;;  %v172_v38 = vrot.slane %v171_v32, 1 }
  0xb9   :  { %v153_v16 = vpop.f32.mrf.mxu1 }
  0xba   :  { %v178_v17 = vadd.f32 %v177_v14, %v176_v8  ;;  %v161_v19 = vmax.f32 %v148_v15, 0.0  ;;  %v154_v20 = vadd.f32 %v153_v16, %v113_v11  ;;  %v173_v44 = vadd.f32 %v172_v38, %v171_v32 }
  0xbc   :  { %v179_v23 = vrot.slane %v178_v17, 2  ;;  %v184_v24 = vsel %vm164_vm2, %v161_v19, 0.0  ;;  %v163_v25 = vmax.f32 %v154_v20, 0.0 }
  0xbd   :  { %v185_v26 = vadd.f32 %v184_v24, %v183_v22 }
  0xbe   :  { %v180_v27 = vadd.f32 %v179_v23, %v178_v17  ;;  %v193_v29 = vsel %vm164_vm2, %v163_v25, 0.0 }
  0xbf   :  { %v186_v30 = vrot.slane %v185_v26, 4  ;;  %v194_v31 = vadd.f32 %v193_v29, %v192_v28 }
  0xc0   :  { %v181_v35 = vrot.slane %v180_v27, 1 }
  0xc1   :  { %v187_v33 = vadd.f32 %v186_v30, %v185_v26  ;;  %v195_v34 = vrot.slane %v194_v31, 4 }
  0xc2   :  { %v182_v41 = vadd.f32 %v181_v35, %v180_v27 }
  0xc3   :  { %v188_v36 = vrot.slane %v187_v33, 2  ;;  %v196_v37 = vadd.f32 %v195_v34, %v194_v31 }
  0xc4   :  { %v209_v47 = vsel %vm208_vm3, %v182_v41, %v173_v44 }
  0xc5   :  { %v189_v39 = vadd.f32 %v188_v36, %v187_v33  ;;  %v197_v40 = vrot.slane %v196_v37, 2 }
  0xc7   :  { %v190_v42 = vrot.slane %v189_v39, 1  ;;  %v198_v43 = vadd.f32 %v197_v40, %v196_v37 }
  0xc9   :  { %v191_v45 = vadd.f32 %v190_v42, %v189_v39  ;;  %v199_v46 = vrot.slane %v198_v43, 1 }
  0xcb   :  { %v200_v48 = vadd.f32 %v199_v46, %v198_v43  ;;  %v211_v49 = vsel %vm210_vm4, %v191_v45, %v209_v47 }
  0xcd   :  { %v213_v50 = vsel %vm212_vm5, %v200_v48, %v211_v49 }
  0xce   :  { %304 = vmatmul.msk.f32.vlgmr.msrb.gmra.mxu2 %vm164_vm2, %v213_v50 }
 0x151   :  { %v237_v52 = vpop.f32.mrf.mxu2 }
 0x152   :  { %v238_v53 = vadd.f32 %v341_v51, %v237_v52 }
 0x154   :  { %v240_v54 = vmax.f32 %v238_v53, 0.0 }
 0x156   :  { %306 = vmatmul.msk.f32.vlgmr.msrb.gmra.mxu3 %vm164_vm2, %v240_v54 }
 0x1d9   :  { %v267_v56 = vpop.f32.mrf.mxu3 }
 0x1da   :  { %v268_v57 = vadd.f32 %v342_v55, %v267_v56 }
 0x1dc   :  { %v307_v58 = vmul.f32 -1.442695, %v268_v57 }
 0x1de   :  { %343 = vpow2.f32 %v307_v58 }
 0x1e4   :  { %v344_v59 = vpop.eup %343 }
 0x1e5   :  { %v273_v60 = vadd.f32 1.0, %v344_v59 }
 0x1e7   :  { %345 = vrcp.f32 %v273_v60  ;;  %v285_v0 = vand.u32 2147483648, %v273_v60  ;;  %v283_v2 = vand.u32 2147483647, %v273_v60  ;;  %vm279_vm7 = vweird.f32 %v273_v60 }
 0x1e9   :  { %v286_v4 = vor.u32 1.1754944e-38, %v285_v0  ;;  %vm284_vm10 = vcmp.eq.f32.partialorder %v283_v2, 8.507059e+37 }
 0x1ed   :  { %v346_v61 = vpop.eup %345 }
 0x1ee   :  { %v275_v62 = vmul.f32 %v346_v61, %v273_v60  ;;  %vm280_vm6 = vweird.f32 %v346_v61 }
 0x1ef   :  { %vm281_vm8 = vmor %vm279_vm7, %vm280_vm6 }
 0x1f0   :  { %v276_v63 = vsub.f32 1.0, %v275_v62 }
 0x1f2   :  { %v277_v1 = vmul.f32 %v346_v61, %v276_v63 }
 0x1f4   :  { %v278_v3 = vadd.f32 %v346_v61, %v277_v1 }
 0x1f6   :  { %v282_v5 = vsel %vm281_vm8, %v346_v61, %v278_v3 }
 0x1f7   :  { %v287_v6 = vsel %vm284_vm10, %v286_v4, %v282_v5 }
 0x1f8   :  { %290 = vst.msk [vmem:[%s507_s3] sm:$0xf] %vm289_vm9, %v287_v6 }

</bundles_post_ra>
